<compile_context>
chip_gen: v5e
topology: v5e:2x2
jax: 0.10.0
libtpu: 0.0.40
codegen_flags: <defaults>
</compile_context>

<pallas_src>
import jax
import jax.numpy as jnp
from jax.experimental import pallas as pl
from jax.experimental.pallas import tpu as pltpu


# ----------------------------------------------------------------------------
# Kernel A: 1x1 conv bottleneck, NCHW-native.
#   out[b, :, hw] = W @ x[b, :, hw] + bias
# ----------------------------------------------------------------------------
def _bottleneck_kernel(x_ref, w_ref, b_ref, o_ref):
    # x: (1, Cin, HW) bf16, w: (Ch, Cin) bf16, b: (Ch, 1) f32, o: (1, Ch, HW) f32
    acc = jnp.dot(w_ref[...], x_ref[0], preferred_element_type=jnp.float32)
    o_ref[0] = (acc + b_ref[...]).astype(o_ref.dtype)


def bottleneck_1x1(x_nchw, w_oc_ic, bias, *, mxu_dtype=jnp.bfloat16):
    """PyTorch nn.Conv2d(Cin, Ch, kernel_size=1) on NCHW input, kept NCHW."""
    B, Cin, H, W = x_nchw.shape
    Ch = w_oc_ic.shape[0]
    HW = H * W
    x = x_nchw.reshape(B, Cin, HW).astype(mxu_dtype)   # free reshape, no transpose
    w = w_oc_ic.astype(mxu_dtype)                      # (Ch, Cin)
    b2 = bias.reshape(Ch, 1).astype(jnp.float32)
    out = pl.pallas_call(
        _bottleneck_kernel,
        out_shape=jax.ShapeDtypeStruct((B, Ch, HW), x_nchw.dtype),
        grid_spec=pltpu.PrefetchScalarGridSpec(
            num_scalar_prefetch=0,
            grid=(B,),
            in_specs=[
                pl.BlockSpec((1, Cin, HW), lambda b: (b, 0, 0)),
                pl.BlockSpec((Ch, Cin), lambda b: (0, 0)),
                pl.BlockSpec((Ch, 1), lambda b: (0, 0)),
            ],
            out_specs=pl.BlockSpec((1, Ch, HW), lambda b: (b, 0, 0)),
        ),
        compiler_params=pltpu.CompilerParams(
            dimension_semantics=("parallel",),
            vmem_limit_bytes=32 * 1024 * 1024,
        ),
    )(x, w, b2)
    return out.reshape(B, Ch, H, W)                    # NCHW, like the torch conv


# ----------------------------------------------------------------------------
# Kernel B+C fused: CORNER box-head correlation + (synthetic) corner head.
#   att[q,hw]   = sum_c enc[hw,c] * dec[q,c]            (VPU mul + lane reduce)
#   opt[q,hw,c] = enc[hw,c] * att[q,hw]                 (VMEM only, never HBM)
#   scores      -> softmax over HW -> soft-argmax -> cxcywh box
# Stand-in for the external Corner_Predictor conv tower: a linear score map
# per corner (tl, br) followed by softmax / expected-coordinate readout.
# ----------------------------------------------------------------------------
def _fused_head_kernel(enc_ref, dec_ref, w_ref, b_ref, cx_ref, cy_ref, box_ref):
    enc = enc_ref[0]                                         # (HW, C) f32
    dec = dec_ref[0]                                         # (Nq, C) f32

    # correlation attention; Nq is tiny so an MXU matmul would waste nearly all
    # of its output columns -> VPU multiply + lane reduce instead.
    att = jnp.sum(dec[:, None, :] * enc[None, :, :], axis=-1)        # (Nq, HW)

    # opt[q, hw, c] = enc[hw, c] * att[q, hw]   (matches torch permute(0,3,2,1)
    # up to layout; stays in VMEM)
    opt = enc[None, :, :] * att[:, :, None]                          # (Nq, HW, C)

    # two score maps (tl / br); HW stays on the lane axis for everything below.
    w = w_ref[...]                                                   # (2, C)
    b = b_ref[...]                                                   # (1, 2)
    s_tl = jnp.sum(opt * w[0:1][None, :, :], axis=-1) + b[:, 0:1]    # (Nq, HW)
    s_br = jnp.sum(opt * w[1:2][None, :, :], axis=-1) + b[:, 1:2]    # (Nq, HW)

    cx = cx_ref[...]                                                 # (1, HW)
    cy = cy_ref[...]                                                 # (1, HW)

    def soft_argmax(s):
        m = jnp.max(s, axis=-1, keepdims=True)
        e = jnp.exp(s - m)
        inv = pl.reciprocal(jnp.sum(e, axis=-1, keepdims=True), approx=True)
        p = e * inv                                                  # (Nq, HW)
        ex = jnp.sum(p * cx, axis=-1, keepdims=True)                 # (Nq, 1)
        ey = jnp.sum(p * cy, axis=-1, keepdims=True)                 # (Nq, 1)
        return ex, ey

    x_tl, y_tl = soft_argmax(s_tl)
    x_br, y_br = soft_argmax(s_br)

    # xyxy -> cxcywh in-kernel; single packed (Nq, 4) store.
    box = jnp.concatenate(
        [(x_tl + x_br) * 0.5, (y_tl + y_br) * 0.5, x_br - x_tl, y_br - y_tl],
        axis=-1,
    )                                                                # (Nq, 4)
    box_ref[0] = box.astype(box_ref.dtype)


def fused_box_head(enc_opt, dec_opt, w_corner, b_corner, feat_sz):
    """enc_opt: (B, HW, C); dec_opt: (B, Nq, C). Returns cxcywh boxes (B, Nq, 4)."""
    B, HW, C = enc_opt.shape
    Nq = dec_opt.shape[1]
    idx = jnp.arange(HW, dtype=jnp.float32)
    coord_x = ((idx % feat_sz) / feat_sz).reshape(1, HW)
    coord_y = (jnp.floor(idx / feat_sz) / feat_sz).reshape(1, HW)
    w2 = jnp.transpose(w_corner, (1, 0)).astype(jnp.float32)         # (2, C)
    b2 = b_corner.reshape(1, 2).astype(jnp.float32)
    return pl.pallas_call(
        _fused_head_kernel,
        out_shape=jax.ShapeDtypeStruct((B, Nq, 4), jnp.float32),
        grid_spec=pltpu.PrefetchScalarGridSpec(
            num_scalar_prefetch=0,
            grid=(B,),
            in_specs=[
                pl.BlockSpec((1, HW, C), lambda b: (b, 0, 0)),
                pl.BlockSpec((1, Nq, C), lambda b: (b, 0, 0)),
                pl.BlockSpec((2, C), lambda b: (0, 0)),
                pl.BlockSpec((1, 2), lambda b: (0, 0)),
                pl.BlockSpec((1, HW), lambda b: (0, 0)),
                pl.BlockSpec((1, HW), lambda b: (0, 0)),
            ],
            out_specs=pl.BlockSpec((1, Nq, 4), lambda b: (b, 0, 0)),
        ),
        compiler_params=pltpu.CompilerParams(
            dimension_semantics=("parallel",),
            vmem_limit_bytes=32 * 1024 * 1024,
        ),
    )(enc_opt, dec_opt, w2, b2, coord_x, coord_y)


# ----------------------------------------------------------------------------
# SPT wrapper (parameters + plain-JAX glue)
# ----------------------------------------------------------------------------
def init_params(key, cin_c, cin_d, hidden, nq):
    ks = jax.random.split(key, 10)
    p = {
        "query_embed": jax.random.normal(ks[0], (nq, hidden), jnp.float32),
        "w_bc": jax.random.normal(ks[1], (hidden, cin_c), jnp.float32)
        / jnp.sqrt(cin_c),
        "b_bc": 0.01 * jax.random.normal(ks[2], (hidden,), jnp.float32),
        "w_bd": jax.random.normal(ks[3], (hidden, cin_d), jnp.float32)
        / jnp.sqrt(cin_d),
        "b_bd": 0.01 * jax.random.normal(ks[4], (hidden,), jnp.float32),
        # deterministic stand-in weights for the external transformer
        "w_enc": jax.random.normal(ks[5], (hidden, hidden), jnp.float32)
        / jnp.sqrt(hidden),
        "w_dec": jax.random.normal(ks[6], (hidden, hidden), jnp.float32)
        / jnp.sqrt(hidden),
        # deterministic stand-in weights for the external corner box head
        "w_corner": jax.random.normal(ks[7], (hidden, 2), jnp.float32)
        / jnp.sqrt(hidden),
        "b_corner": 0.01 * jax.random.normal(ks[8], (2,), jnp.float32),
    }
    return p


class SPTPallas:
    def __init__(self, params, feat_sz, hidden, num_queries, head_type="CORNER"):
        self.p = params
        self.head_type = head_type
        self.feat_sz_s = int(feat_sz)
        self.feat_len_s = int(feat_sz**2)
        self.hidden = hidden
        self.num_queries = num_queries

    # -- adjust_color / adjust_depth (bottleneck 1x1 conv is the hot path) ----
    def _adjust(self, src_feat, mask, pos, w, b):
        feat = bottleneck_1x1(src_feat, w, b)                    # (B, Ch, H, W)
        B, Ch, H, W = feat.shape
        feat_vec = jnp.transpose(feat.reshape(B, Ch, H * W), (2, 0, 1))  # (HW,B,Ch)
        pos_vec = jnp.transpose(pos.reshape(B, Ch, H * W), (2, 0, 1))
        mask_vec = mask.reshape(B, H * W)
        return {"feat": feat_vec, "mask": mask_vec, "pos": pos_vec}

    def forward_backbone_color(self, src_feat, mask, pos):
        # TODO(synk): backbone_color CNN is an external injected module;
        # src_feat/pos stand in for its (already-strided) outputs.
        return self._adjust(src_feat, mask, pos, self.p["w_bc"], self.p["b_bc"])

    def forward_backbone_depth(self, src_feat, mask, pos):
        # TODO(synk): backbone_depth CNN is an external injected module.
        return self._adjust(src_feat, mask, pos, self.p["w_bd"], self.p["b_bd"])

    # -- transformer mode ------------------------------------------------------
    def forward_transformer(self, seq_dict_c, seq_dict_d):
        # TODO(synk): the real encoder/decoder transformer is an external
        # injected module; deterministic linear stand-in with matching
        # interface shapes: enc_mem (HW1+HW2, B, C), output_embed (1, B, Nq, C).
        feat = jnp.concatenate(
            [seq_dict_c["feat"] + seq_dict_c["pos"],
             seq_dict_d["feat"] + seq_dict_d["pos"]],
            axis=0,
        )                                                        # (L, B, C)
        enc_mem = jnp.tanh(jnp.einsum("lbc,cd->lbd", feat, self.p["w_enc"]))
        ctx = jnp.einsum("lbc,cd->bd", enc_mem, self.p["w_dec"]) / enc_mem.shape[0]
        hs = (
            self.p["query_embed"][None, None, :, :]
            + ctx[None, :, None, :]
        )                                                        # (1, B, Nq, C)
        out, coords = self.forward_box_head(hs, enc_mem)
        return out, coords, hs

    # -- CORNER box head: single fused Pallas kernel ---------------------------
    def forward_box_head(self, hs, memory):
        enc_opt = jnp.transpose(memory[-self.feat_len_s:], (1, 0, 2))  # (B, HW, C)
        dec_opt = hs[0]                                                # (B, Nq, C)
        coords = fused_box_head(
            enc_opt, dec_opt, self.p["w_corner"], self.p["b_corner"], self.feat_sz_s
        )                                                              # (B, Nq, 4)
        return {"pred_boxes": coords}, coords


# ----------------------------------------------------------------------------
if __name__ == "__main__":
    B, Cin, H, W = 2, 4, 8, 8
    hidden, num_queries, feat_sz = 32, 1, 8

    key = jax.random.PRNGKey(0)
    kp, k1, k2, k3, k4 = jax.random.split(key, 5)

    spt = SPTPallas(
        init_params(kp, Cin, Cin, hidden, num_queries),
        feat_sz=feat_sz, hidden=hidden, num_queries=num_queries,
    )

    src_c = jax.random.normal(k1, (B, Cin, H, W), jnp.float32)
    pos_c = jax.random.normal(k2, (B, hidden, H, W), jnp.float32)
    src_d = jax.random.normal(k3, (B, Cin, H, W), jnp.float32)
    pos_d = jax.random.normal(k4, (B, hidden, H, W), jnp.float32)
    mask = jnp.zeros((B, H, W), jnp.float32)

    seq_c = spt.forward_backbone_color(src_c, mask, pos_c)
    seq_d = spt.forward_backbone_depth(src_d, mask, pos_d)
    out, coords, hs = spt.forward_transformer(seq_c, seq_d)

    jax.block_until_ready((out["pred_boxes"], coords, hs))
    assert coords.shape == (B, num_queries, 4)
    assert bool(jnp.all(jnp.isfinite(coords)))
    print("KERNEL_OK")
</pallas_src>

<mosaic_0001>
module attributes {stable_mosaic.version = 11 : i64} {
  func.func @_bottleneck_kernel(%arg0: i32, %arg1: memref<1x4x64xbf16, #tpu.memory_space<vmem>>, %arg2: memref<32x4xbf16, #tpu.memory_space<vmem>>, %arg3: memref<32x1xf32, #tpu.memory_space<vmem>>, %arg4: memref<1x32x64xf32, #tpu.memory_space<vmem>>) attributes {dimension_semantics = [#tpu.dimension_semantics<parallel>], iteration_bounds = array<i64: 2>, scalar_prefetch = 0 : i64, scratch_operands = 0 : i64, tpu.core_type = #tpu.core_type<tc>, window_params = [{transform_indices = @transform_0, window_bounds = array<i64: 1, 4, 64>}, {pipeline_mode = #tpu.pipeline_mode<synchronous>, transform_indices = @transform_1, window_bounds = array<i64: 32, 4>}, {pipeline_mode = #tpu.pipeline_mode<synchronous>, transform_indices = @transform_2, window_bounds = array<i64: 32, 1>}, {transform_indices = @transform_3, window_bounds = array<i64: 1, 32, 64>}]} {
    %c0 = arith.constant 0 : index
    %c0_0 = arith.constant 0 : index
    %0 = vector.load %arg2[%c0, %c0_0] : memref<32x4xbf16, #tpu.memory_space<vmem>>, vector<32x4xbf16>
    %c0_1 = arith.constant 0 : index
    %c0_2 = arith.constant 0 : index
    %c0_3 = arith.constant 0 : index
    %1 = vector.load %arg1[%c0_1, %c0_2, %c0_3] : memref<1x4x64xbf16, #tpu.memory_space<vmem>>, vector<1x4x64xbf16>
    %2 = vector.shape_cast %1 : vector<1x4x64xbf16> to vector<4x64xbf16>
    %cst = arith.constant dense<0.000000e+00> : vector<32x64xf32>
    %3 = tpu.matmul %0, %2, %cst {dimension_numbers = #tpu.dot_dimension_numbers<[1], [0], [0], [1], [0, 0, 1, 1], [], []>} : vector<32x4xbf16>, vector<4x64xbf16>, vector<32x64xf32> -> vector<32x64xf32>
    %c0_4 = arith.constant 0 : index
    %c0_5 = arith.constant 0 : index
    %4 = vector.load %arg3[%c0_4, %c0_5] : memref<32x1xf32, #tpu.memory_space<vmem>>, vector<32x1xf32>
    %5 = vector.broadcast %4 : vector<32x1xf32> to vector<32x64xf32>
    %6 = arith.addf %3, %5 : vector<32x64xf32>
    %c0_6 = arith.constant 0 : index
    %c0_7 = arith.constant 0 : index
    %c0_8 = arith.constant 0 : index
    %7 = vector.load %arg4[%c0_6, %c0_7, %c0_8] : memref<1x32x64xf32, #tpu.memory_space<vmem>>, vector<1x32x64xf32>
    %8 = vector.shape_cast %7 : vector<1x32x64xf32> to vector<32x64xf32>
    %9 = vector.shape_cast %6 : vector<32x64xf32> to vector<1x32x64xf32>
    tpu.vector_store %arg4[%c0_6, %c0_7, %c0_8], %9 {strides = array<i32>} : memref<1x32x64xf32, #tpu.memory_space<vmem>>, vector<1x32x64xf32>,
    return
  }
  func.func @transform_0(%arg0: i32) -> (i32, i32, i32) {
    %c0_i32 = arith.constant 0 : i32
    %c0_i32_0 = arith.constant 0 : i32
    %c0_i32_1 = arith.constant 0 : i32
    return %arg0, %c0_i32, %c0_i32_0 : i32, i32, i32
  }
  func.func @transform_1(%arg0: i32) -> (i32, i32) {
    %c0_i32 = arith.constant 0 : i32
    %c0_i32_0 = arith.constant 0 : i32
    %c0_i32_1 = arith.constant 0 : i32
    return %c0_i32, %c0_i32_0 : i32, i32
  }
  func.func @transform_2(%arg0: i32) -> (i32, i32) {
    %c0_i32 = arith.constant 0 : i32
    %c0_i32_0 = arith.constant 0 : i32
    %c0_i32_1 = arith.constant 0 : i32
    return %c0_i32, %c0_i32_0 : i32, i32
  }
  func.func @transform_3(%arg0: i32) -> (i32, i32, i32) {
    %c0_i32 = arith.constant 0 : i32
    %c0_i32_0 = arith.constant 0 : i32
    %c0_i32_1 = arith.constant 0 : i32
    return %arg0, %c0_i32, %c0_i32_0 : i32, i32, i32
  }
}

</mosaic_0001>

<bundles_post_ra>
// kernel: tpu_custom_call.1
= control target key start
LH: loop header
LB: loop body
LE: loop exit
PB: predicated region body
PF: predicated region fallthrough
CT: control target
= control target key end

     0   :  { %8 = vsyncpa [#allocation3], 0  ;;  %s582_s0 = inlined_call_operand.vmem [shape: bf16[2,4,64], index: 0, kind: input, shape index: {}]   ;;  %s583_s1 = inlined_call_operand.vmem [shape: bf16[32,4], index: 1, kind: input, shape index: {}]   ;;  %s584_s2 = inlined_call_operand.vmem [shape: f32[32,1], index: 2, kind: input, shape index: {}]   ;;  %s585_s3 = inlined_call_operand.hbm [shape: f32[2,32,64], index: 3, kind: output, shape index: {}]  }
   0x1   :  { %10 = vsyncpa [#allocation3 + $0x1], 0  ;;  %s475_s12 = smov 0   ;;  %s477_s13 = smov 0  }
   0x2   :  { %s479_s14 = smov 0   ;;  %s481_s15 = smov 0  }
   0x3 LB: > { %s496_s16 = sadd.s32 4294967295, %s450_s15   ;;  %s319_s17 = sadd.s32 4294967294, %s450_s15   ;;  %s450_s15 = sphi %s481_s15, %s591_s15   ;;  %s446_s14 = sphi %s479_s14, %s590_s14   ;;  %s442_s13 = sphi %s477_s13, %s589_s13   ;;  %s438_s12 = sphi %s475_s12, %s588_s12  }
   0x4   : > { %s500_s18 = sadd.s32 1, %s450_s15   ;;  %s91_s19 = sadd.s32 1, %s446_s14 }
   0x5   : > { %s88_s20 = ssub.s32 %s450_s15, %s500_s18  ;;  %p101_p0 = scmp.ne.s32.totalorder %s446_s14, %s442_s13 }
   0x6   : > { %p89_p1 = scmp.eq.s32.totalorder %s88_s20, 0  ;;  %p102_p2 = scmp.eq.s32.totalorder %s496_s16, 1 }
   0x7   : > { %p107_p3 = scmp.ne.s32.totalorder %s442_s13, %s438_s12  ;;  %p108_p4 = scmp.eq.s32.totalorder %s319_s17, 1 }
   0x8   : > { %s511_s21 = scalar_select %p89_p1, %s446_s14, %s91_s19  }
   0x9   : > { %p513_p5 = por %p102_p2, %p101_p0  ;;  %p517_p6 = por %p108_p4, %p107_p3 }
   0xa   : > { %p322_p7 = scmp.ge.s32.totalorder %s450_s15, 1  ;;  %p139_p8 = scmp.lt.s32.totalorder %s450_s15, 3 }
   0xc   : > { %p140_p9 = pnand %p322_p7, %p139_p8 }
   0xd   : > { %p162_p10 = scmp.lt.s32.totalorder (!%p140_p9), %s496_s16, 1  ;;  %s159_s20 = sand.u32 (!%p140_p9), 1, %s442_s13  }
   0xe   : > { %143 = sbr.rel (%p140_p9) target bundleno = 169 (0xa9), region = 32  ;;  %s323_s24 = sshll.u32 (!%p140_p9), %s159_s20, 5 }
   0xf   : > { %s342_s25 = sshll.u32 (!%p140_p9), %s496_s16, 5  ;;  %s161_s26 = scalar_lea.vmem (!%p140_p9), [#allocation2], %s323_s24 }
  0x10   : > { %s254_s30 = sshll.u32 (!%p140_p9), %s161_s26, 4  ;;  %s408_s9 = scalar_lea.hbm (!%p140_p9), %s585_s3, 64  ;;  %s255_s30 = int_to_ptr.vmem [resolvable:$true] %s254_s30 }
  0x13   : > { %v452_v0 = vmov 0   ;;  %v174_v1 = vld [vmem:[%s584_s2 + $0x10] sm:$0xff]  ;;  %v172_v2 = vld [vmem:[%s584_s2] sm:$0xff]  ;;  %s163_s28 = scalar_select %p162_p10, %s496_s16, 1  ;;  %vm213_vm0 = vcmask 1041408   ;;  %v341_v6 = vld [vmem:[%s583_s1 + $0x8] sm:$0xff] }
  0x14   : > { %387 = vset.pattern.permute.xlu1 %v452_v0  ;;  %386 = vset.pattern.permute.xlu0 %v452_v0  ;;  %v340_v4 = vld [vmem:[%s583_s1] sm:$0xff]  ;;  %v175_v7 = vld [vmem:[%s584_s2 + $0x18] sm:$0xff]  ;;  %v173_v8 = vld [vmem:[%s584_s2 + $0x8] sm:$0xff]  ;;  %vm206_vm1 = vcmask 31744   ;;  %vm236_vm2 = vcmask 523264   ;;  %s242_s16 = scalar_lea.sflag [#allocation3], %s159_s20 }
  0x15   : > { %188 = vperm.xlu1 %387, %v174_v1   ;;  %178 = vperm.xlu0 %386, %v172_v2   ;;  %s324_s29 = sshll.u32 %s163_s28, 1 }
  0x16   : > { %s165_s5 = scalar_lea.vmem %s582_s0, %s324_s29  ;;  %s253_s29 = scalar_lea.hbm %s585_s3, %s342_s25 }
  0x17   : > { %v171_v3 = vld [vmem:[%s165_s5] sm:$0x3]  ;;  %s256_s4 = sshll.u32 %s253_s29, 4  ;;  %s257_s4 = int_to_ptr.hbm [resolvable:$true] %s256_s4 }
  0x18   : > { %v215_v5 = vsel %vm213_vm0, %v171_v3, 0  ;;  %s402_s5 = sshra.s32 %s257_s4, 4  ;;  %s403_s5 = int_to_ptr.hbm [resolvable:$true] %s402_s5 }
  0x19   : > { %224 = vmatpush.bf16.msra.mxu0 %v215_v5  ;;  %343 = vmatpush.bf16.msra.mxu1 %v215_v5  ;;  %s404_s6 = scalar_lea.hbm %s403_s5, 32  ;;  %p409_p0 = scmp.lt.s32.totalorder %s403_s5, %s585_s3 }
  0x1a   : > { %p405_p11 = scmp.ne.s32.totalorder %s403_s5, %s404_s6  ;;  %p410_p1 = scmp.lt.s32.totalorder %s408_s9, %s404_s6 }
  0x1c   : > { %333 = vmatmul.msk.bf16.vlgmr.msra.gmra.mxu0 %vm206_vm1, %v340_v4  ;;  %334 = vmatmul.msk.bf16.vlgmr.msra.gmra.mxu1 %vm206_vm1, %v341_v6  ;;  %p406_p12 = pnand %p405_p11, %p513_p5  ;;  %p411_p2 = por %p410_p1, %p409_p0 }
  0x1d   : > { %193 = vperm.xlu1 %387, %v175_v7   ;;  %183 = vperm.xlu0 %386, %v173_v8  }
  0x1e   : > { %p407_p13 = pneg %p406_p12 }
  0x20   : > { %p412_p3 = pnand %p411_p2, %p407_p13 }
  0x87   : > { %v189_v9 = vpop.permute.xlu1 %188  ;;  %v179_v10 = vpop.permute.xlu0 %178 }
  0x8f   : > { %v194_v15 = vpop.permute.xlu1 %193  ;;  %v184_v16 = vpop.permute.xlu0 %183 }
  0x99   : > { %v226_v11 = vpop.f32.mrf.mxu0  ;;  %v231_v12 = vpop.f32.mrf.mxu1 }
  0x9a   : > { %v227_v13 = vadd.f32 %v226_v11, %v179_v10  ;;  %v232_v14 = vadd.f32 %v231_v12, %v189_v9 }
  0x9c   : > { %237 = vst.msk [vmem:[%s161_s26] sm:$0xff] %vm236_vm2, %v227_v13 }
  0x9d   : > { %239 = vst.msk [vmem:[%s161_s26 + $0x10] sm:$0xff] %vm236_vm2, %v232_v14 }
  0xa1   : > { %v228_v17 = vpop.f32.mrf.mxu0  ;;  %v233_v18 = vpop.f32.mrf.mxu1 }
  0xa2   : > { %v229_v19 = vadd.f32 %v228_v17, %v184_v16  ;;  %v234_v20 = vadd.f32 %v233_v18, %v194_v15 }
  0xa4   : > { %238 = vst.msk [vmem:[%s161_s26 + $0x8] sm:$0xff] %vm236_vm2, %v229_v19 }
  0xa5   : > { %240 = vst.msk [vmem:[%s161_s26 + $0x18] sm:$0xff] %vm236_vm2, %v234_v20 }
  0xa6   : > { %415 = shalt.err (!%p412_p3)
}
  0xa7   : > { %s453_s17 = smov 128   ;;  %s454_s19 = smov 8  }
  0xa8   : > { %344 = dma.vmem_to_hbm [thread:$0]  (%p513_p5), %s255_s30, 512, %s257_s4, %s242_s16, %s453_s17, %s453_s17, %s454_s19  }
  0xa9 PF: > { %p350_p4 = scmp.ge.s32.totalorder %s450_s15, 2  ;;  %s271_s20 = sand.u32 1, %s438_s12  }
  0xaa   : > { %s272_s24 = scalar_lea.sflag [#allocation3], %s271_s20 }
  0xab   : > { %p347_p7 = pnand %p350_p4, %p517_p6 }
  0xad   : > { %p348_p8 = pneg %p347_p7 }
  0xaf   : > { %433 = dma.done.wait (%p348_p8), %s272_s24, 512  }
  0xb0   : > { %435 = vsyncadd (%p348_p8), %s272_s24, 4294966784  ;;  %p13_p9 = scmp.ge.s32.totalorder %s500_s18, 4   ;;  %s588_s12 = smov %s442_s13 }
  0xb1   : > { %s589_s13 = smov %s446_s14  ;;  %s590_s14 = smov %s511_s21 }
  0xb2   : > { %s591_s15 = smov %s500_s18  ;;  %15 = sbr.rel (!%p13_p9) target bundleno = 3 (0x3), region = 67 }
  0xb7   :  { %278 = vsyncpa [#allocation3], 1 }
  0xb8   :  { %280 = vsyncpa [#allocation3 + $0x1], 1 }

</bundles_post_ra>
